<compile_context>
chip_gen: v5e
topology: v5e:2x2
jax: 0.10.0
libtpu: 0.0.40
codegen_flags: <defaults>
</compile_context>

<pallas_src>
import jax
import jax.numpy as jnp
from jax.experimental import pallas as pl
from jax.experimental.pallas import tpu as pltpu


def _static_pow(v, n):
    """v ** n for a static positive int n via square-and-multiply."""
    result = None
    base = v
    while n > 0:
        if n & 1:
            result = base if result is None else result * base
        n >>= 1
        if n:
            base = base * base
    return result


def _make_kernel(num_pufs, num_stages, hidden_sizes, num_y_xors, num_scan_steps):
    P, N, Y = num_pufs, num_stages, num_y_xors
    H = list(hidden_sizes)
    L = len(H)
    PH0 = P * H[0]
    S = num_scan_steps

    def mm(a, b):
        return jnp.dot(a, b, preferred_element_type=jnp.float32)

    def kernel(x_ref, sw_ref, sb_ref, *rest):
        out_ref = rest[-1]
        w = rest[:-1]   # [wcat, bcat, (w1,b1) .. (w_{L-1},b_{L-1}), wx, bx]

        # ---- batch-in-lanes challenge tile, upcast from narrow dtype --------
        xf = x_ref[...].astype(jnp.float32)            # (N, TB)

        # ---- feature vector: fvm[i, b] = prod_{j >= i} (1 - 2 x[j, b]) ------
        # Exact log-depth doubling scan: each step multiplies by the value
        # shifted down by 2^s rows (out-of-range rows contribute 1.0, folded
        # into the precomputed shift matrices / bias columns).  No log/exp.
        p = 1.0 - 2.0 * xf
        for s in range(S):
            p = p * (mm(sw_ref[s], p) + sb_ref[s])
        fvm = p                                        # (N, TB)

        # ---- fused first matmul: x-MLP layer 0 + packed y arbiters ----------
        z = mm(w[0][...], fvm) + w[1][...]             # (P*H0 + Y*P, TB)
        h = jnp.maximum(z[:PH0, :], 0.0)               # (P*H0, TB)
        R = z[PH0:, :]                                 # (Y*P, TB), rows j*P + p

        # ---- deeper block-diagonal x-MLP layers + scalar x head -------------
        for l in range(1, L):
            h = jnp.maximum(mm(w[2 * l][...], h) + w[2 * l + 1][...], 0.0)
        x_raw = mm(w[2 * L][...], h) + w[2 * L + 1][...]      # (P, TB)
        x_sig = 1.0 / (1.0 + jnp.exp(-x_raw))          # exact (raised to Y-th power)

        # ---- per-PUF product over the Y xor arbiters (xor-major rows) -------
        rprod = R[0:P, :]
        for j in range(1, Y):
            rprod = rprod * R[j * P:(j + 1) * P, :]

        y_raw = _static_pow(x_sig, Y) * rprod          # (P, TB)
        out_ref[...] = pl.reciprocal(1.0 + jnp.exp(-y_raw),
                                     approx=True).astype(out_ref.dtype)

    return kernel


def pack_params(params, *, num_multi_pufs, num_stages, num_y_xors, y_pivot,
                x_neurons_per_layer):
    """One-time packing of per-PUF weights into fused / block-diagonal,
    batch-in-lanes (transposed) form, plus the suffix-scan constants."""
    P, N, Y = num_multi_pufs, num_stages, num_y_xors
    H = list(x_neurons_per_layer)
    L = len(H)

    # suffix-product doubling-scan constants (hoisted out of the kernel).
    S = max(1, (N - 1).bit_length())
    idx = jnp.arange(N)
    sw, sb = [], []
    for s in range(S):
        k = 1 << s
        sw.append(((idx[:, None] + k) == idx[None, :]).astype(jnp.float32))
        sb.append(((idx + k) >= N).astype(jnp.float32)[:, None])
    scan_w = jnp.stack(sw, 0)                                   # (S, N, N)
    scan_b = jnp.stack(sb, 0)                                   # (S, N, 1)

    def block_diag_T(w):            # (P, a, b) -> (P*b, P*a), blocks = w[p].T
        _, a, b = w.shape
        out = jnp.zeros((P * b, P * a), w.dtype)
        for p in range(P):
            out = out.at[p * b:(p + 1) * b, p * a:(p + 1) * a].set(w[p].T)
        return out

    # layer 0 (input is shared): (P, N, H0) -> (P*H0, N), row = p*H0 + h.
    w0 = params["x_w"][0]
    w0_t = jnp.transpose(w0, (0, 2, 1)).reshape(P * H[0], N)
    b0_t = params["x_b"][0].reshape(P * H[0], 1)

    # y arbiter: fold the duplicated pivot stage and the |x| column into an
    # (Y*P, N) weight plus an (Y*P, 1) bias column; rows are xor-index major
    # (row = j*P + p).
    wy = params["y_w"]                                          # (P, N+2, Y)
    wy_eff = jnp.concatenate([
        wy[:, :y_pivot, :],
        wy[:, y_pivot:y_pivot + 1, :] + wy[:, y_pivot + 1:y_pivot + 2, :],
        wy[:, y_pivot + 2:N + 1, :],
        wy[:, N + 1:N + 2, :],
    ], axis=1)                                                  # (P, N+1, Y)
    wy_t = jnp.transpose(wy_eff, (2, 0, 1)).reshape(Y * P, N + 1)
    wy_main, wy_bias = wy_t[:, :N], wy_t[:, N:N + 1]

    # fuse the two matmuls that contract against the feature vector.
    wcat = jnp.concatenate([w0_t, wy_main], axis=0)             # (P*H0+Y*P, N)
    bcat = jnp.concatenate([b0_t, wy_bias], axis=0)             # (P*H0+Y*P, 1)

    packed = [scan_w, scan_b, wcat, bcat]
    for l in range(1, L):
        wl = params["x_w"][l]                                   # (P, H_{l-1}, H_l)
        packed.append(block_diag_T(wl))                         # (P*H_l, P*H_{l-1})
        packed.append(params["x_b"][l].reshape(P * H[l], 1))
    packed.append(block_diag_T(params["x_out_w"]))              # (P, P*H_last)
    packed.append(params["x_out_b"].reshape(P, 1))
    return packed


def _batch_tiling(B, max_tile=2048, lane=128):
    """Pick a lane-multiple batch tile and the padded batch size."""
    tb = lane
    while tb * 2 <= max_tile and tb * 2 <= max(B, lane):
        tb *= 2
    b_pad = pl.cdiv(B, tb) * tb
    return b_pad, tb


def _const_spec(arr):
    nd = arr.ndim
    return pl.BlockSpec(arr.shape, lambda *_: (0,) * nd)


def multi_hybrid_ipuf_forward(x, packed_weights, *, num_multi_pufs, num_stages,
                              num_y_xors, y_pivot, x_neurons_per_layer,
                              max_batch_tile=2048):
    """Returns (num_multi_pufs, batch) sigmoid outputs, matching the torch module.

    `x` is the (batch, num_stages) challenge matrix in any numeric dtype
    (int8/bool challenge bits recommended: the kernel upcasts internally).
    """
    del y_pivot  # already folded into the packed y weights
    B, N = x.shape
    assert N == num_stages
    P = num_multi_pufs

    B_pad, TB = _batch_tiling(B, max_tile=max_batch_tile)

    # batch-in-lanes layout: (N, B_pad); keep the caller's (narrow) dtype.
    x_t = jnp.transpose(x)
    if B_pad != B:
        x_t = jnp.pad(x_t, ((0, 0), (0, B_pad - B)))

    grid = (B_pad // TB,)
    in_specs = [pl.BlockSpec((N, TB), lambda i: (0, i))]
    in_specs += [_const_spec(w) for w in packed_weights]

    kernel = _make_kernel(P, num_stages, x_neurons_per_layer, num_y_xors,
                          num_scan_steps=packed_weights[0].shape[0])

    out = pl.pallas_call(
        kernel,
        out_shape=jax.ShapeDtypeStruct((P, B_pad), jnp.float32),
        grid=grid,
        in_specs=in_specs,
        out_specs=pl.BlockSpec((P, TB), lambda i: (0, i)),
        compiler_params=pltpu.CompilerParams(dimension_semantics=("parallel",)),
    )(x_t, *packed_weights)

    return out[:, :B] if B_pad != B else out         # (num_multi_pufs, B)


def init_params(key, num_multi_pufs, num_stages, x_neurons_per_layer, num_y_xors):
    P, N = num_multi_pufs, num_stages
    L = len(x_neurons_per_layer)
    keys = jax.random.split(key, 2 * L + 3)
    k = iter(keys)

    x_w, x_b = [], []
    last = N
    for h in x_neurons_per_layer:
        bound = 1.0 / (last ** 0.5)                   # mimic torch nn.Linear init
        x_w.append(jax.random.uniform(next(k), (P, last, h), jnp.float32, -bound, bound))
        x_b.append(jax.random.uniform(next(k), (P, 1, h), jnp.float32, -bound, bound))
        last = h
    bound = 1.0 / (last ** 0.5)
    x_out_w = jax.random.uniform(next(k), (P, last, 1), jnp.float32, -bound, bound)
    x_out_b = jax.random.uniform(next(k), (P, 1, 1), jnp.float32, -bound, bound)
    yb = 1.0 / ((N + 2) ** 0.5)
    y_w = jax.random.uniform(next(k), (P, N + 2, num_y_xors), jnp.float32, -yb, yb)

    return {"x_w": x_w, "x_b": x_b, "x_out_w": x_out_w, "x_out_b": x_out_b, "y_w": y_w}


def reference_forward(x, params, *, num_multi_pufs, num_stages, num_y_xors,
                      y_pivot, x_neurons_per_layer):
    """Pure-JAX reference mirroring the PyTorch forward (per-PUF semantics)."""
    del num_stages, num_y_xors
    hp = jax.lax.Precision.HIGHEST
    t = 1.0 - 2.0 * x
    fvm = jnp.flip(jnp.cumprod(jnp.flip(t, -1), axis=-1), -1)
    L = len(x_neurons_per_layer)
    outs = []
    for p in range(num_multi_pufs):
        h = fvm
        for l in range(L):
            h = jnp.maximum(jnp.dot(h, params["x_w"][l][p], precision=hp)
                            + params["x_b"][l][p], 0.0)
        x_sig = jax.nn.sigmoid(jnp.dot(h, params["x_out_w"][p], precision=hp)
                               + params["x_out_b"][p])
        x_abs = jnp.abs(x_sig)
        yfv = jnp.concatenate(
            [fvm[:, :y_pivot + 1] * x_sig, fvm[:, y_pivot:] * x_abs, x_abs], axis=1)
        ry = jnp.dot(yfv, params["y_w"][p], precision=hp)
        outs.append(jax.nn.sigmoid(jnp.prod(ry, axis=-1)))
    return jnp.stack(outs, axis=0)


if __name__ == "__main__":
    cfg = dict(num_multi_pufs=2, num_stages=16, num_y_xors=4, y_pivot=8,
               x_neurons_per_layer=[32, 32])

    key = jax.random.PRNGKey(0)
    k_param, k_x = jax.random.split(key)
    params = init_params(k_param, cfg["num_multi_pufs"], cfg["num_stages"],
                         cfg["x_neurons_per_layer"], cfg["num_y_xors"])
    packed = pack_params(params, **cfg)               # one-time weight packing

    # B not a multiple of 128 -> exercises batch padding and a 2-step
    # "parallel" grid (both TensorCores get work on v7x).
    B = 200
    x_bits = jax.random.bernoulli(k_x, 0.5, (B, cfg["num_stages"]))
    x_i8 = x_bits.astype(jnp.int8)                    # narrow challenge dtype

    out = multi_hybrid_ipuf_forward(x_i8, packed, **cfg)
    out = jax.block_until_ready(out)

    ref = jax.block_until_ready(
        reference_forward(x_bits.astype(jnp.float32), params, **cfg))
    assert out.shape == (cfg["num_multi_pufs"], B)
    assert jnp.allclose(out, ref, atol=5e-3, rtol=5e-3), (out, ref)

    print("KERNEL_OK")
</pallas_src>

<mosaic_0001>
module attributes {stable_mosaic.version = 11 : i64} {
  func.func @kernel(%arg0: i32, %arg1: memref<16x128xi8, #tpu.memory_space<vmem>>, %arg2: memref<4x16x16xf32, #tpu.memory_space<vmem>>, %arg3: memref<4x16x1xf32, #tpu.memory_space<vmem>>, %arg4: memref<72x16xf32, #tpu.memory_space<vmem>>, %arg5: memref<72x1xf32, #tpu.memory_space<vmem>>, %arg6: memref<64x64xf32, #tpu.memory_space<vmem>>, %arg7: memref<64x1xf32, #tpu.memory_space<vmem>>, %arg8: memref<2x64xf32, #tpu.memory_space<vmem>>, %arg9: memref<2x1xf32, #tpu.memory_space<vmem>>, %arg10: memref<2x128xf32, #tpu.memory_space<vmem>>) attributes {dimension_semantics = [#tpu.dimension_semantics<parallel>], iteration_bounds = array<i64: 2>, scalar_prefetch = 0 : i64, scratch_operands = 0 : i64, tpu.core_type = #tpu.core_type<tc>, window_params = [{transform_indices = @transform_0, window_bounds = array<i64: 16, 128>}, {pipeline_mode = #tpu.pipeline_mode<synchronous>, transform_indices = @transform_1, window_bounds = array<i64: 4, 16, 16>}, {pipeline_mode = #tpu.pipeline_mode<synchronous>, transform_indices = @transform_2, window_bounds = array<i64: 4, 16, 1>}, {pipeline_mode = #tpu.pipeline_mode<synchronous>, transform_indices = @transform_3, window_bounds = array<i64: 72, 16>}, {pipeline_mode = #tpu.pipeline_mode<synchronous>, transform_indices = @transform_4, window_bounds = array<i64: 72, 1>}, {pipeline_mode = #tpu.pipeline_mode<synchronous>, transform_indices = @transform_5, window_bounds = array<i64: 64, 64>}, {pipeline_mode = #tpu.pipeline_mode<synchronous>, transform_indices = @transform_6, window_bounds = array<i64: 64, 1>}, {pipeline_mode = #tpu.pipeline_mode<synchronous>, transform_indices = @transform_7, window_bounds = array<i64: 2, 64>}, {pipeline_mode = #tpu.pipeline_mode<synchronous>, transform_indices = @transform_8, window_bounds = array<i64: 2, 1>}, {transform_indices = @transform_9, window_bounds = array<i64: 2, 128>}]} {
    %c0 = arith.constant 0 : index
    %c0_0 = arith.constant 0 : index
    %0 = vector.load %arg1[%c0, %c0_0] : memref<16x128xi8, #tpu.memory_space<vmem>>, vector<16x128xi8>
    %1 = arith.sitofp %0 : vector<16x128xi8> to vector<16x128xf32>
    %cst = arith.constant 2.000000e+00 : f32
    %2 = vector.broadcast %cst : f32 to vector<16x128xf32>
    %3 = arith.mulf %2, %1 : vector<16x128xf32>
    %cst_1 = arith.constant 1.000000e+00 : f32
    %4 = vector.broadcast %cst_1 : f32 to vector<16x128xf32>
    %5 = arith.subf %4, %3 : vector<16x128xf32>
    %c0_2 = arith.constant 0 : index
    %c0_3 = arith.constant 0 : index
    %c0_4 = arith.constant 0 : index
    %6 = vector.load %arg2[%c0_2, %c0_3, %c0_4] : memref<4x16x16xf32, #tpu.memory_space<vmem>>, vector<1x16x16xf32>
    %7 = vector.shape_cast %6 : vector<1x16x16xf32> to vector<16x16xf32>
    %cst_5 = arith.constant dense<0.000000e+00> : vector<16x128xf32>
    %8 = tpu.matmul %7, %5, %cst_5 {dimension_numbers = #tpu.dot_dimension_numbers<[1], [0], [0], [1], [0, 0, 1, 1], [], []>} : vector<16x16xf32>, vector<16x128xf32>, vector<16x128xf32> -> vector<16x128xf32>
    %c0_6 = arith.constant 0 : index
    %c0_7 = arith.constant 0 : index
    %c0_8 = arith.constant 0 : index
    %9 = vector.load %arg3[%c0_6, %c0_7, %c0_8] : memref<4x16x1xf32, #tpu.memory_space<vmem>>, vector<1x16x1xf32>
    %10 = vector.shape_cast %9 : vector<1x16x1xf32> to vector<16x1xf32>
    %11 = vector.broadcast %10 : vector<16x1xf32> to vector<16x128xf32>
    %12 = arith.addf %8, %11 : vector<16x128xf32>
    %13 = arith.mulf %5, %12 : vector<16x128xf32>
    %c1 = arith.constant 1 : index
    %c0_9 = arith.constant 0 : index
    %c0_10 = arith.constant 0 : index
    %14 = vector.load %arg2[%c1, %c0_9, %c0_10] : memref<4x16x16xf32, #tpu.memory_space<vmem>>, vector<1x16x16xf32>
    %15 = vector.shape_cast %14 : vector<1x16x16xf32> to vector<16x16xf32>
    %cst_11 = arith.constant dense<0.000000e+00> : vector<16x128xf32>
    %16 = tpu.matmul %15, %13, %cst_11 {dimension_numbers = #tpu.dot_dimension_numbers<[1], [0], [0], [1], [0, 0, 1, 1], [], []>} : vector<16x16xf32>, vector<16x128xf32>, vector<16x128xf32> -> vector<16x128xf32>
    %c1_12 = arith.constant 1 : index
    %c0_13 = arith.constant 0 : index
    %c0_14 = arith.constant 0 : index
    %17 = vector.load %arg3[%c1_12, %c0_13, %c0_14] : memref<4x16x1xf32, #tpu.memory_space<vmem>>, vector<1x16x1xf32>
    %18 = vector.shape_cast %17 : vector<1x16x1xf32> to vector<16x1xf32>
    %19 = vector.broadcast %18 : vector<16x1xf32> to vector<16x128xf32>
    %20 = arith.addf %16, %19 : vector<16x128xf32>
    %21 = arith.mulf %13, %20 : vector<16x128xf32>
    %c2 = arith.constant 2 : index
    %c0_15 = arith.constant 0 : index
    %c0_16 = arith.constant 0 : index
    %22 = vector.load %arg2[%c2, %c0_15, %c0_16] : memref<4x16x16xf32, #tpu.memory_space<vmem>>, vector<1x16x16xf32>
    %23 = vector.shape_cast %22 : vector<1x16x16xf32> to vector<16x16xf32>
    %cst_17 = arith.constant dense<0.000000e+00> : vector<16x128xf32>
    %24 = tpu.matmul %23, %21, %cst_17 {dimension_numbers = #tpu.dot_dimension_numbers<[1], [0], [0], [1], [0, 0, 1, 1], [], []>} : vector<16x16xf32>, vector<16x128xf32>, vector<16x128xf32> -> vector<16x128xf32>
    %c2_18 = arith.constant 2 : index
    %c0_19 = arith.constant 0 : index
    %c0_20 = arith.constant 0 : index
    %25 = vector.load %arg3[%c2_18, %c0_19, %c0_20] : memref<4x16x1xf32, #tpu.memory_space<vmem>>, vector<1x16x1xf32>
    %26 = vector.shape_cast %25 : vector<1x16x1xf32> to vector<16x1xf32>
    %27 = vector.broadcast %26 : vector<16x1xf32> to vector<16x128xf32>
    %28 = arith.addf %24, %27 : vector<16x128xf32>
    %29 = arith.mulf %21, %28 : vector<16x128xf32>
    %c3 = arith.constant 3 : index
    %c0_21 = arith.constant 0 : index
    %c0_22 = arith.constant 0 : index
    %30 = vector.load %arg2[%c3, %c0_21, %c0_22] : memref<4x16x16xf32, #tpu.memory_space<vmem>>, vector<1x16x16xf32>
    %31 = vector.shape_cast %30 : vector<1x16x16xf32> to vector<16x16xf32>
    %cst_23 = arith.constant dense<0.000000e+00> : vector<16x128xf32>
    %32 = tpu.matmul %31, %29, %cst_23 {dimension_numbers = #tpu.dot_dimension_numbers<[1], [0], [0], [1], [0, 0, 1, 1], [], []>} : vector<16x16xf32>, vector<16x128xf32>, vector<16x128xf32> -> vector<16x128xf32>
    %c3_24 = arith.constant 3 : index
    %c0_25 = arith.constant 0 : index
    %c0_26 = arith.constant 0 : index
    %33 = vector.load %arg3[%c3_24, %c0_25, %c0_26] : memref<4x16x1xf32, #tpu.memory_space<vmem>>, vector<1x16x1xf32>
    %34 = vector.shape_cast %33 : vector<1x16x1xf32> to vector<16x1xf32>
    %35 = vector.broadcast %34 : vector<16x1xf32> to vector<16x128xf32>
    %36 = arith.addf %32, %35 : vector<16x128xf32>
    %37 = arith.mulf %29, %36 : vector<16x128xf32>
    %c0_27 = arith.constant 0 : index
    %c0_28 = arith.constant 0 : index
    %38 = vector.load %arg4[%c0_27, %c0_28] : memref<72x16xf32, #tpu.memory_space<vmem>>, vector<72x16xf32>
    %cst_29 = arith.constant dense<0.000000e+00> : vector<72x128xf32>
    %39 = tpu.matmul %38, %37, %cst_29 {dimension_numbers = #tpu.dot_dimension_numbers<[1], [0], [0], [1], [0, 0, 1, 1], [], []>} : vector<72x16xf32>, vector<16x128xf32>, vector<72x128xf32> -> vector<72x128xf32>
    %c0_30 = arith.constant 0 : index
    %c0_31 = arith.constant 0 : index
    %40 = vector.load %arg5[%c0_30, %c0_31] : memref<72x1xf32, #tpu.memory_space<vmem>>, vector<72x1xf32>
    %41 = vector.broadcast %40 : vector<72x1xf32> to vector<72x128xf32>
    %42 = arith.addf %39, %41 : vector<72x128xf32>
    %43 = vector.extract_strided_slice %42 {offsets = [0, 0], sizes = [64, 128], strides = [1, 1]} : vector<72x128xf32> to vector<64x128xf32>
    %cst_32 = arith.constant 0.000000e+00 : f32
    %44 = vector.broadcast %cst_32 : f32 to vector<64x128xf32>
    %45 = arith.maximumf %43, %44 : vector<64x128xf32>
    %46 = vector.extract_strided_slice %42 {offsets = [64, 0], sizes = [8, 128], strides = [1, 1]} : vector<72x128xf32> to vector<8x128xf32>
    %c0_33 = arith.constant 0 : index
    %c0_34 = arith.constant 0 : index
    %47 = vector.load %arg6[%c0_33, %c0_34] : memref<64x64xf32, #tpu.memory_space<vmem>>, vector<64x64xf32>
    %cst_35 = arith.constant dense<0.000000e+00> : vector<64x128xf32>
    %48 = tpu.matmul %47, %45, %cst_35 {dimension_numbers = #tpu.dot_dimension_numbers<[1], [0], [0], [1], [0, 0, 1, 1], [], []>} : vector<64x64xf32>, vector<64x128xf32>, vector<64x128xf32> -> vector<64x128xf32>
    %c0_36 = arith.constant 0 : index
    %c0_37 = arith.constant 0 : index
    %49 = vector.load %arg7[%c0_36, %c0_37] : memref<64x1xf32, #tpu.memory_space<vmem>>, vector<64x1xf32>
    %50 = vector.broadcast %49 : vector<64x1xf32> to vector<64x128xf32>
    %51 = arith.addf %48, %50 : vector<64x128xf32>
    %cst_38 = arith.constant 0.000000e+00 : f32
    %52 = vector.broadcast %cst_38 : f32 to vector<64x128xf32>
    %53 = arith.maximumf %51, %52 : vector<64x128xf32>
    %c0_39 = arith.constant 0 : index
    %c0_40 = arith.constant 0 : index
    %54 = vector.load %arg8[%c0_39, %c0_40] : memref<2x64xf32, #tpu.memory_space<vmem>>, vector<2x64xf32>
    %cst_41 = arith.constant dense<0.000000e+00> : vector<2x128xf32>
    %55 = tpu.matmul %54, %53, %cst_41 {dimension_numbers = #tpu.dot_dimension_numbers<[1], [0], [0], [1], [0, 0, 1, 1], [], []>} : vector<2x64xf32>, vector<64x128xf32>, vector<2x128xf32> -> vector<2x128xf32>
    %c0_42 = arith.constant 0 : index
    %c0_43 = arith.constant 0 : index
    %56 = vector.load %arg9[%c0_42, %c0_43] : memref<2x1xf32, #tpu.memory_space<vmem>>, vector<2x1xf32>
    %57 = vector.broadcast %56 : vector<2x1xf32> to vector<2x128xf32>
    %58 = arith.addf %55, %57 : vector<2x128xf32>
    %cst_44 = arith.constant 0.000000e+00 : f32
    %59 = vector.broadcast %cst_44 : f32 to vector<2x128xf32>
    %60 = arith.subf %59, %58 : vector<2x128xf32>
    %61 = math.exp %60 : vector<2x128xf32>
    %cst_45 = arith.constant 1.000000e+00 : f32
    %62 = vector.broadcast %cst_45 : f32 to vector<2x128xf32>
    %63 = arith.addf %62, %61 : vector<2x128xf32>
    %cst_46 = arith.constant 1.000000e+00 : f32
    %64 = vector.broadcast %cst_46 : f32 to vector<2x128xf32>
    %65 = arith.divf %64, %63 : vector<2x128xf32>
    %66 = vector.extract_strided_slice %46 {offsets = [0, 0], sizes = [2, 128], strides = [1, 1]} : vector<8x128xf32> to vector<2x128xf32>
    %67 = vector.extract_strided_slice %46 {offsets = [2, 0], sizes = [2, 128], strides = [1, 1]} : vector<8x128xf32> to vector<2x128xf32>
    %68 = arith.mulf %66, %67 : vector<2x128xf32>
    %69 = vector.extract_strided_slice %46 {offsets = [4, 0], sizes = [2, 128], strides = [1, 1]} : vector<8x128xf32> to vector<2x128xf32>
    %70 = arith.mulf %68, %69 : vector<2x128xf32>
    %71 = vector.extract_strided_slice %46 {offsets = [6, 0], sizes = [2, 128], strides = [1, 1]} : vector<8x128xf32> to vector<2x128xf32>
    %72 = arith.mulf %70, %71 : vector<2x128xf32>
    %73 = arith.mulf %65, %65 : vector<2x128xf32>
    %74 = arith.mulf %73, %73 : vector<2x128xf32>
    %75 = arith.mulf %74, %72 : vector<2x128xf32>
    %cst_47 = arith.constant 0.000000e+00 : f32
    %76 = vector.broadcast %cst_47 : f32 to vector<2x128xf32>
    %77 = arith.subf %76, %75 : vector<2x128xf32>
    %78 = math.exp %77 : vector<2x128xf32>
    %cst_48 = arith.constant 1.000000e+00 : f32
    %79 = vector.broadcast %cst_48 : f32 to vector<2x128xf32>
    %80 = arith.addf %79, %78 : vector<2x128xf32>
    %81 = tpu.reciprocal %80 {approx = true} : vector<2x128xf32> -> vector<2x128xf32>
    %c0_49 = arith.constant 0 : index
    %c0_50 = arith.constant 0 : index
    %82 = vector.load %arg10[%c0_49, %c0_50] : memref<2x128xf32, #tpu.memory_space<vmem>>, vector<2x128xf32>
    tpu.vector_store %arg10[%c0_49, %c0_50], %81 {strides = array<i32>} : memref<2x128xf32, #tpu.memory_space<vmem>>, vector<2x128xf32>,
    return
  }
  func.func @transform_0(%arg0: i32) -> (i32, i32) {
    %c0_i32 = arith.constant 0 : i32
    %c0_i32_0 = arith.constant 0 : i32
    return %c0_i32, %arg0 : i32, i32
  }
  func.func @transform_1(%arg0: i32) -> (i32, i32, i32) {
    %c0_i32 = arith.constant 0 : i32
    %c0_i32_0 = arith.constant 0 : i32
    %c0_i32_1 = arith.constant 0 : i32
    %c0_i32_2 = arith.constant 0 : i32
    return %c0_i32, %c0_i32_0, %c0_i32_1 : i32, i32, i32
  }
  func.func @transform_2(%arg0: i32) -> (i32, i32, i32) {
    %c0_i32 = arith.constant 0 : i32
    %c0_i32_0 = arith.constant 0 : i32
    %c0_i32_1 = arith.constant 0 : i32
    %c0_i32_2 = arith.constant 0 : i32
    return %c0_i32, %c0_i32_0, %c0_i32_1 : i32, i32, i32
  }
  func.func @transform_3(%arg0: i32) -> (i32, i32) {
    %c0_i32 = arith.constant 0 : i32
    %c0_i32_0 = arith.constant 0 : i32
    %c0_i32_1 = arith.constant 0 : i32
    return %c0_i32, %c0_i32_0 : i32, i32
  }
  func.func @transform_4(%arg0: i32) -> (i32, i32) {
    %c0_i32 = arith.constant 0 : i32
    %c0_i32_0 = arith.constant 0 : i32
    %c0_i32_1 = arith.constant 0 : i32
    return %c0_i32, %c0_i32_0 : i32, i32
  }
  func.func @transform_5(%arg0: i32) -> (i32, i32) {
    %c0_i32 = arith.constant 0 : i32
    %c0_i32_0 = arith.constant 0 : i32
    %c0_i32_1 = arith.constant 0 : i32
    return %c0_i32, %c0_i32_0 : i32, i32
  }
  func.func @transform_6(%arg0: i32) -> (i32, i32) {
    %c0_i32 = arith.constant 0 : i32
    %c0_i32_0 = arith.constant 0 : i32
    %c0_i32_1 = arith.constant 0 : i32
    return %c0_i32, %c0_i32_0 : i32, i32
  }
  func.func @transform_7(%arg0: i32) -> (i32, i32) {
    %c0_i32 = arith.constant 0 : i32
    %c0_i32_0 = arith.constant 0 : i32
    %c0_i32_1 = arith.constant 0 : i32
    return %c0_i32, %c0_i32_0 : i32, i32
  }
  func.func @transform_8(%arg0: i32) -> (i32, i32) {
    %c0_i32 = arith.constant 0 : i32
    %c0_i32_0 = arith.constant 0 : i32
    %c0_i32_1 = arith.constant 0 : i32
    return %c0_i32, %c0_i32_0 : i32, i32
  }
  func.func @transform_9(%arg0: i32) -> (i32, i32) {
    %c0_i32 = arith.constant 0 : i32
    %c0_i32_0 = arith.constant 0 : i32
    return %c0_i32, %arg0 : i32, i32
  }
}

</mosaic_0001>

<bundles_post_ra>
// kernel: tpu_custom_call.1
= control target key start
LH: loop header
LB: loop body
LE: loop exit
PB: predicated region body
PF: predicated region fallthrough
CT: control target
= control target key end

     0   :  { %s1495_s0 = inlined_call_operand.vmem [shape: s8[16,256], index: 0, kind: input, shape index: {}]   ;;  %s1496_s1 = inlined_call_operand.vmem [shape: f32[4,16,16], index: 1, kind: input, shape index: {}]   ;;  %s1497_s2 = inlined_call_operand.vmem [shape: f32[4,16,1], index: 2, kind: input, shape index: {}]   ;;  %s1498_s3 = inlined_call_operand.vmem [shape: f32[72,16], index: 3, kind: input, shape index: {}]   ;;  %s1499_s4 = inlined_call_operand.vmem [shape: f32[72,1], index: 4, kind: input, shape index: {}]   ;;  %s1500_s5 = inlined_call_operand.vmem [shape: f32[64,64], index: 5, kind: input, shape index: {}]   ;;  %s1501_s6 = inlined_call_operand.vmem [shape: f32[64,1], index: 6, kind: input, shape index: {}]   ;;  %s1502_s7 = inlined_call_operand.vmem [shape: f32[2,64], index: 7, kind: input, shape index: {}]   ;;  %s1503_s8 = inlined_call_operand.vmem [shape: f32[2,1], index: 8, kind: input, shape index: {}]   ;;  %s1504_s9 = inlined_call_operand.hbm [shape: f32[2,256], index: 9, kind: output, shape index: {}]  }
   0x1   :  { %1505 = sst [smem:[#allocation6_spill]] %s1495_s0 }
   0x2   :  { %14 = vsyncpa [#allocation4], 0 }
   0x3   :  { %16 = vsyncpa [#allocation4 + $0x1], 0  ;;  %s1218_s30 = smov 0   ;;  %s1220_s10 = smov 0  }
   0x4   :  { %s1222_s11 = smov 0   ;;  %s1224_s12 = smov 0  }
   0x5 LB: > { %s987_s13 = sadd.s32 4294967295, %s1165_s12   ;;  %s988_s14 = sadd.s32 4294967294, %s1165_s12   ;;  %s1165_s12 = sphi %s1224_s12, %s1512_s12   ;;  %s1161_s11 = sphi %s1222_s11, %s1511_s11   ;;  %s1157_s10 = sphi %s1220_s10, %s1510_s10   ;;  %s1153_s30 = sphi %s1218_s30, %s1509_s30  }
   0x6   : > { %s1241_s15 = sadd.s32 1, %s1165_s12   ;;  %s29_s16 = sadd.s32 1, %s1161_s11 }
   0x7   : > { %s26_s17 = ssub.s32 %s1165_s12, %s1241_s15  ;;  %p36_p0 = scmp.ne.s32.totalorder %s1161_s11, %s1157_s10 }
   0x8   : > { %p27_p1 = scmp.eq.s32.totalorder %s26_s17, 0  ;;  %p37_p2 = scmp.eq.s32.totalorder %s1165_s12, 0 }
   0x9   : > { %p234_p3 = scmp.eq.s32.totalorder %s987_s13, 1  ;;  %p239_p4 = scmp.ne.s32.totalorder %s1157_s10, %s1153_s30 }
   0xa   : > { %s1254_s18 = scalar_select %p27_p1, %s1161_s11, %s29_s16  }
   0xb   : > { %p38_p5 = por %p37_p2, %p36_p0  ;;  %p1256_p6 = por %p234_p3, %p36_p0 }
   0xc   : > { %p240_p7 = scmp.eq.s32.totalorder %s988_s14, 1  ;;  %p990_p9 = scmp.ge.s32.totalorder %s1165_s12, 2 }
   0xe   : > { %p1260_p8 = por %p240_p7, %p239_p4  ;;  %280 = sbr.rel (%p990_p9) target bundleno = 31 (0x1f), region = 48 }
  0x13   : > { %283 = sbr.rel (!%p38_p5) target bundleno = 31 (0x1f), region = 52  ;;  %s285_s21 = sand.u32 (%p38_p5), 1, %s1161_s11  }
  0x14   : > { %s992_s22 = sshll.u32 (%p38_p5), %s1165_s12, 1  ;;  %s991_s23 = sshll.u32 (%p38_p5), %s285_s21, 2 }
  0x15   : > { %s1508_s0 = sld [smem:[#allocation6_spill]] (%p38_p5)  ;;  %s287_s27 = scalar_lea.vmem (%p38_p5), [#allocation2], %s991_s23 }
  0x1b   : > { %s289_s26 = scalar_lea.vmem %s1508_s0, %s992_s22 }
  0x1c   : > { %v306_v0 = vld [vmem:[%s289_s26] sm:$0x3]  ;;  %v308_v1 = vld [vmem:[%s289_s26 + $0x4] sm:$0x3] }
  0x1d   : > { %307 = vst [vmem:[%s287_s27] sm:$0x3] %v306_v0 }
  0x1e   : > { %309 = vst [vmem:[%s287_s27 + $0x2] sm:$0x3] %v308_v1 }
  0x1f PF: > { %p993_p10 = scmp.ge.s32.totalorder %s1165_s12, 1  ;;  %p328_p11 = scmp.lt.s32.totalorder %s1165_s12, 3 }
  0x21   : > { %p329_p12 = pnand %p993_p10, %p328_p11 }
  0x22   : > { %s1278_s14 = sand.u32 (!%p329_p12), 1, %s1157_s10   ;;  %s1035_s25 = sshll.u32 (!%p329_p12), %s987_s13, 1 }
  0x23   : > { %332 = sbr.rel (%p329_p12) target bundleno = 1163 (0x48b), region = 86  ;;  %s994_s16 = sshll.u32 (!%p329_p12), %s1278_s14, 2 }
  0x24   : > { %s337_s17 = scalar_lea.vmem (!%p329_p12), [#allocation2], %s994_s16  ;;  %s995_s24 = sshll.u32 (!%p329_p12), %s1278_s14, 1 }
  0x25   : > { %s918_s28 = scalar_lea.hbm (!%p329_p12), %s1504_s9, %s1035_s25  ;;  %s369_s29 = scalar_lea.vmem (!%p329_p12), [#allocation3], %s995_s24 }
  0x26   : > { %s920_s16 = sshll.u32 (!%p329_p12), %s369_s29, 4  ;;  %s908_s21 = scalar_lea.sflag (!%p329_p12), [#allocation4], %s1278_s14  ;;  %s921_s16 = int_to_ptr.vmem [resolvable:$true] %s920_s16 }
  0x27   : > { %s1123_s25 = scalar_lea.hbm (!%p329_p12), %s1504_s9, 4 }
  0x28   : > { %v383_v2 = vld [vmem:[%s1497_s2 + $0x8] sm:$0xff]  ;;  %v1167_v3 = vmov 0   ;;  %v1039_v4 = vld [vmem:[%s337_s17] sm:$0xf]   ;;  %vm394_vm0 = vcmask 130048   ;;  %v1013_v15 = vld [vmem:[%s1497_s2 + $0x38] sm:$0xff] }
  0x29   : > { %1092 = vset.pattern.permute.xlu0 %v1167_v3  ;;  %1093 = vset.pattern.permute.xlu1 %v1167_v3  ;;  %v1041_v5 = vunpack.c.1.s8 %v1039_v4  ;;  %v1040_v6 = vunpack.c.0.s8 %v1039_v4  ;;  %v382_v9 = vld [vmem:[%s1497_s2] sm:$0xff]  ;;  %v381_v16 = vld [vmem:[%s1496_s1 + $0x8] sm:$0xff]  ;;  %v582_v17 = vld [vmem:[%s1499_s4 + $0x30] sm:$0xff]  ;;  %vm765_vm1 = vcmask 523264   ;;  %s922_s17 = sshll.u32 %s918_s28, 4  ;;  %s923_s17 = int_to_ptr.hbm [resolvable:$true] %s922_s17 }
  0x2a   : > { %391 = vperm.xlu0 %1092, %v383_v2   ;;  %1094 = vset.pattern.permute.xlu2 %v1167_v3  ;;  %v380_v14 = vld [vmem:[%s1496_s1] sm:$0xff]  ;;  %v579_v18 = vld [vmem:[%s1499_s4 + $0x18] sm:$0xff]  ;;  %v1000_v21 = vld [vmem:[%s1497_s2 + $0x10] sm:$0xff]  ;;  %s1117_s22 = sshra.s32 %s923_s17, 4  ;;  %s1118_s22 = int_to_ptr.hbm [resolvable:$true] %s1117_s22 }
  0x2b   : > { %v375_v7 = vcvt.s32.f32 %v1041_v5  ;;  %v374_v8 = vcvt.s32.f32 %v1040_v6  ;;  %v1001_v19 = vld [vmem:[%s1497_s2 + $0x18] sm:$0xff]  ;;  %v576_v20 = vld [vmem:[%s1499_s4] sm:$0xff]  ;;  %v722_v22 = vld [vmem:[%s1501_s6 + $0x28] sm:$0xff]  ;;  %s1119_s23 = scalar_lea.hbm %s1118_s22, 2  ;;  %p1124_p2 = scmp.lt.s32.totalorder %s1118_s22, %s1504_s9 }
  0x2c   : > { %439 = vperm.xlu1 %1093, %v1001_v19   ;;  %v719_v23 = vld [vmem:[%s1501_s6 + $0x10] sm:$0xff]  ;;  %v840_v24 = vld [vmem:[%s1503_s8] sm:$0x3]  ;;  %v581_v26 = vld [vmem:[%s1499_s4 + $0x28] sm:$0xff]  ;;  %p1120_p13 = scmp.ne.s32.totalorder %s1118_s22, %s1119_s23  ;;  %p1125_p3 = scmp.lt.s32.totalorder %s1123_s25, %s1119_s23 }
  0x2d   : > { %v377_v10 = vmul.f32 2.0, %v375_v7  ;;  %v376_v11 = vmul.f32 2.0, %v374_v8  ;;  %v1012_v25 = vld [vmem:[%s1497_s2 + $0x30] sm:$0xff]  ;;  %v724_v28 = vld [vmem:[%s1501_s6 + $0x38] sm:$0xff]  ;;  %v721_v29 = vld [vmem:[%s1501_s6 + $0x20] sm:$0xff] }
  0x2e   : > { %v578_v27 = vld [vmem:[%s1499_s4 + $0x10] sm:$0xff]  ;;  %v718_v30 = vld [vmem:[%s1501_s6 + $0x8] sm:$0xff]  ;;  %v584_v31 = vld [vmem:[%s1499_s4 + $0x40] sm:$0xff]  ;;  %p1121_p0 = pnand %p1120_p13, %p1256_p6  ;;  %p1126_p4 = por %p1125_p3, %p1124_p2 }
  0x2f   : > { %v379_v12 = vsub.f32 1.0, %v377_v10  ;;  %v378_v13 = vsub.f32 1.0, %v376_v11  ;;  %v998_v40 = vld [vmem:[%s1496_s1 + $0x10] sm:$0xff]  ;;  %v999_v41 = vld [vmem:[%s1496_s1 + $0x18] sm:$0xff]  ;;  %v1007_v42 = vld [vmem:[%s1497_s2 + $0x28] sm:$0xff] }
  0x30   : > { %486 = vperm.xlu2 %1094, %v1007_v42   ;;  %v1006_v43 = vld [vmem:[%s1497_s2 + $0x20] sm:$0xff]  ;;  %v583_v44 = vld [vmem:[%s1499_s4 + $0x38] sm:$0xff]  ;;  %v577_v47 = vld [vmem:[%s1499_s4 + $0x8] sm:$0xff]  ;;  %p1122_p1 = pneg %p1121_p0 }
  0x31   : > { %415 = vmatpush.msra.mxu0 %v379_v12  ;;  %v580_v45 = vld [vmem:[%s1499_s4 + $0x20] sm:$0xff]  ;;  %v723_v49 = vld [vmem:[%s1501_s6 + $0x30] sm:$0xff]  ;;  %v720_v57 = vld [vmem:[%s1501_s6 + $0x18] sm:$0xff] }
  0x32   : > { %386 = vperm.xlu0 %1092, %v382_v9   ;;  %v1004_v56 = vld [vmem:[%s1496_s1 + $0x20] sm:$0xff]  ;;  %v1005_v58 = vld [vmem:[%s1496_s1 + $0x28] sm:$0xff]  ;;  %v1010_v4 = vld [vmem:[%s1496_s1 + $0x30] sm:$0xff]  ;;  %p1127_p5 = pnand %p1126_p4, %p1122_p1 }
  0x33   : > { %416 = vmatpush.msra.mxu0 %v378_v13  ;;  %v717_v59 = vld [vmem:[%s1501_s6] sm:$0xff]  ;;  %v1011_v5 = vld [vmem:[%s1496_s1 + $0x38] sm:$0xff] }
  0x34   : > { %996 = vmatmul.msk.f32.vlgmr.msra.gmra.mxu0 %vm394_vm0, %v380_v14  ;;  %434 = vperm.xlu1 %1093, %v1000_v21   ;;  %v567_v14 = vld [vmem:[%s1498_s3] sm:$0xff]  ;;  %v574_v19 = vld [vmem:[%s1498_s3 + $0x38] sm:$0xff] }
  0x35   : > { %v575_v21 = vld [vmem:[%s1498_s3 + $0x40] sm:$0xff] }
  0x38   : > { %481 = vperm.xlu2 %1094, %v1006_v43  }
  0x3a   : > { %533 = vperm.xlu0 %1092, %v1013_v15   ;;  %v572_v15 = vld [vmem:[%s1498_s3 + $0x28] sm:$0xff] }
  0x3c   : > { %997 = vmatmul.msk.f32.gmra.mxu0 %vm394_vm0, %v381_v16  ;;  %528 = vperm.xlu1 %1093, %v1012_v25   ;;  %v568_v16 = vld [vmem:[%s1498_s3 + $0x8] sm:$0xff] }
  0x40   : > { %622 = vperm.xlu2 %1094, %v583_v44  }
  0x42   : > { %617 = vperm.xlu0 %1092, %v582_v17   ;;  %v573_v17 = vld [vmem:[%s1498_s3 + $0x30] sm:$0xff] }
  0x44   : > { %612 = vperm.xlu1 %1093, %v581_v26  }
  0x48   : > { %607 = vperm.xlu2 %1094, %v580_v45  }
  0x4a   : > { %602 = vperm.xlu0 %1092, %v579_v18   ;;  %v569_v18 = vld [vmem:[%s1498_s3 + $0x10] sm:$0xff] }
  0x4c   : > { %597 = vperm.xlu1 %1093, %v578_v27  }
  0x50   : > { %592 = vperm.xlu2 %1094, %v577_v47  }
  0x52   : > { %587 = vperm.xlu0 %1092, %v576_v20   ;;  %v570_v20 = vld [vmem:[%s1498_s3 + $0x18] sm:$0xff] }
  0x54   : > { %762 = vperm.xlu1 %1093, %v724_v28  }
  0x58   : > { %757 = vperm.xlu2 %1094, %v723_v49  }
  0x5a   : > { %752 = vperm.xlu0 %1092, %v722_v22   ;;  %v571_v22 = vld [vmem:[%s1498_s3 + $0x20] sm:$0xff] }
  0x5c   : > { %747 = vperm.xlu1 %1093, %v721_v29  }
  0x60   : > { %742 = vperm.xlu2 %1094, %v720_v57   ;;  %v710_v57 = vld [vmem:[%s1500_s5 + $0x8] sm:$0xff] }
  0x62   : > { %737 = vperm.xlu0 %1092, %v719_v23  }
  0x64   : > { %732 = vperm.xlu1 %1093, %v718_v30  }
  0x68   : > { %727 = vperm.xlu2 %1094, %v717_v59   ;;  %v711_v59 = vld [vmem:[%s1500_s5 + $0x10] sm:$0xff] }
  0x6a   : > { %843 = vperm.xlu0 %1092, %v840_v24  }
  0x6c   : > { %627 = vperm.xlu1 %1093, %v584_v31  }
  0x8a   : > { %v487_v60 = vpop.permute.xlu2 %486 }
  0x92   : > { %v482_v62 = vpop.permute.xlu2 %481 }
  0x9a   : > { %v623_v27 = vpop.permute.xlu2 %622 }
  0x9c   : > { %v392_v32 = vpop.permute.xlu0 %391 }
  0x9e   : > { %v440_v46 = vpop.permute.xlu1 %439 }
  0xa4   : > { %v387_v34 = vpop.permute.xlu0 %386 }
  0xa6   : > { %v435_v50 = vpop.permute.xlu1 %434 }
  0xac   : > { %v534_v7 = vpop.permute.xlu0 %533 }
  0xae   : > { %v529_v8 = vpop.permute.xlu1 %528 }
  0xb1   : > { %v418_v33 = vpop.f32.mrf.mxu0 }
  0xb2   : > { %v419_v36 = vadd.f32 %v418_v33, %v387_v34 }
  0xb4   : > { %v424_v39 = vmul.f32 %v419_v36, %v378_v13  ;;  %v618_v29 = vpop.permute.xlu0 %617 }
  0xb6   : > { %v613_v33 = vpop.permute.xlu1 %612 }
  0xb9   : > { %v421_v35 = vpop.f32.mrf.mxu0 }
  0xba   : > { %v422_v37 = vadd.f32 %v421_v35, %v392_v32 }
  0xbc   : > { %v425_v38 = vmul.f32 %v422_v37, %v379_v12  ;;  %v608_v37 = vpop.permute.xlu2 %607 }
  0xbe   : > { %462 = vmatpush.msra.mxu1 %v425_v38  ;;  %v598_v44 = vpop.permute.xlu1 %597 }
  0xc0   : > { %463 = vmatpush.msra.mxu1 %v424_v39 }
  0xc1   : > { %1002 = vmatmul.msk.f32.vlgmr.msra.gmra.mxu1 %vm394_vm0, %v998_v40 }
  0xc4   : > { %v593_v47 = vpop.permute.xlu2 %592 }
  0xc9   : > { %1003 = vmatmul.msk.f32.gmra.mxu1 %vm394_vm0, %v999_v41 }
 0x13e   : > { %v465_v48 = vpop.f32.mrf.mxu1 }
 0x13f   : > { %v466_v52 = vadd.f32 %v465_v48, %v435_v50 }
 0x141   : > { %v471_v55 = vmul.f32 %v466_v52, %v424_v39  ;;  %v603_v39 = vpop.permute.xlu0 %602 }
 0x146   : > { %v468_v51 = vpop.f32.mrf.mxu1 }
 0x147   : > { %v469_v53 = vadd.f32 %v468_v51, %v440_v46 }
 0x149   : > { %v472_v54 = vmul.f32 %v469_v53, %v425_v38  ;;  %v588_v50 = vpop.permute.xlu0 %587 }
 0x14b   : > { %509 = vmatpush.msra.mxu2 %v472_v54 }
 0x14d   : > { %510 = vmatpush.msra.mxu2 %v471_v55 }
 0x14e   : > { %1008 = vmatmul.msk.f32.vlgmr.msra.gmra.mxu2 %vm394_vm0, %v1004_v56  ;;  %v714_v56 = vld [vmem:[%s1500_s5 + $0x28] sm:$0xff] }
 0x156   : > { %1009 = vmatmul.msk.f32.gmra.mxu2 %vm394_vm0, %v1005_v58  ;;  %v715_v58 = vld [vmem:[%s1500_s5 + $0x30] sm:$0xff] }
 0x1d1   : > { %v512_v61 = vpop.f32.mrf.mxu2 }
 0x1d2   : > { %v513_v0 = vadd.f32 %v512_v61, %v482_v62  ;;  %v712_v61 = vld [vmem:[%s1500_s5 + $0x18] sm:$0xff]  ;;  %v713_v62 = vld [vmem:[%s1500_s5 + $0x20] sm:$0xff] }
 0x1d4   : > { %v518_v3 = vmul.f32 %v513_v0, %v471_v55  ;;  %v709_v55 = vld [vmem:[%s1500_s5] sm:$0xff] }
 0x1d9   : > { %v515_v63 = vpop.f32.mrf.mxu2 }
 0x1da   : > { %v516_v1 = vadd.f32 %v515_v63, %v487_v60  ;;  %v716_v60 = vld [vmem:[%s1500_s5 + $0x38] sm:$0xff] }
 0x1dc   : > { %v519_v2 = vmul.f32 %v516_v1, %v472_v54 }
 0x1de   : > { %556 = vmatpush.msra.mxu3 %v519_v2 }
 0x1e0   : > { %557 = vmatpush.msra.mxu3 %v518_v3 }
 0x1e1   : > { %1014 = vmatmul.msk.f32.vlgmr.msra.gmra.mxu3 %vm394_vm0, %v1010_v4 }
 0x1e9   : > { %1015 = vmatmul.msk.f32.gmra.mxu3 %vm394_vm0, %v1011_v5  ;;  %v758_v5 = vpop.permute.xlu2 %757 }
 0x264   : > { %v559_v6 = vpop.f32.mrf.mxu3 }
 0x265   : > { %v560_v10 = vadd.f32 %v559_v6, %v529_v8 }
 0x267   : > { %v565_v13 = vmul.f32 %v560_v10, %v518_v3  ;;  %v763_v3 = vpop.permute.xlu1 %762 }
 0x26c   : > { %v562_v9 = vpop.f32.mrf.mxu3 }
 0x26d   : > { %v563_v11 = vadd.f32 %v562_v9, %v534_v7  ;;  %v753_v9 = vpop.permute.xlu0 %752 }
 0x26f   : > { %v566_v12 = vmul.f32 %v563_v11, %v519_v2 }
 0x271   : > { %671 = vmatpush.msrb.mxu0 %v566_v12  ;;  %1042 = vmatpush.msrb.mxu3 %v566_v12 }
 0x273   : > { %672 = vmatpush.msrb.mxu0 %v565_v13  ;;  %1043 = vmatpush.msrb.mxu3 %v565_v13  ;;  %v748_v13 = vpop.permute.xlu1 %747 }
 0x274   : > { %1016 = vmatmul.msk.f32.vlgmr.msrb.gmra.mxu0 %vm394_vm0, %v567_v14  ;;  %1021 = vmatmul.msk.f32.vlgmr.msrb.gmra.mxu3 %vm394_vm0, %v572_v15  ;;  %v743_v15 = vpop.permute.xlu2 %742 }
 0x27c   : > { %1017 = vmatmul.msk.f32.gmra.mxu0 %vm394_vm0, %v568_v16  ;;  %1022 = vmatmul.msk.f32.gmra.mxu3 %vm394_vm0, %v573_v17 }
 0x284   : > { %1018 = vmatmul.msk.f32.gmra.mxu0 %vm394_vm0, %v569_v18  ;;  %1023 = vmatmul.msk.f32.gmra.mxu3 %vm394_vm0, %v574_v19 }
 0x28c   : > { %1019 = vmatmul.msk.f32.gmra.mxu0 %vm394_vm0, %v570_v20  ;;  %1024 = vmatmul.msk.f32.gmra.mxu3 %vm394_vm0, %v575_v21  ;;  %v738_v20 = vpop.permute.xlu0 %737 }
 0x294   : > { %1020 = vmatmul.msk.f32.gmra.mxu0 %vm394_vm0, %v571_v22 }
 0x2f1   : > { %v674_v23 = vpop.f32.mrf.mxu0 }
 0x2f2   : > { %v675_v51 = vadd.f32 %v674_v23, %v588_v50  ;;  %v733_v23 = vpop.permute.xlu1 %732 }
 0x2f4   : > { %v701_v54 = vmax.f32 %v675_v51, 0.0 }
 0x2f7   : > { %v689_v24 = vpop.f32.mrf.mxu3 }
 0x2f8   : > { %v690_v35 = vadd.f32 %v689_v24, %v613_v33 }
 0x2f9   : > { %v677_v25 = vpop.f32.mrf.mxu0 }
 0x2fa   : > { %v706_v40 = vmax.f32 %v690_v35, 0.0  ;;  %v678_v48 = vadd.f32 %v677_v25, %v593_v47 }
 0x2fc   : > { %v702_v53 = vmax.f32 %v678_v48, 0.0 }
 0x2ff   : > { %v692_v26 = vpop.f32.mrf.mxu3 }
 0x300   : > { %v693_v31 = vadd.f32 %v692_v26, %v618_v29  ;;  %v728_v26 = vpop.permute.xlu2 %727 }
 0x301   : > { %v680_v28 = vpop.f32.mrf.mxu0 }
 0x302   : > { %v707_v38 = vmax.f32 %v693_v31, 0.0  ;;  %v681_v45 = vadd.f32 %v680_v28, %v598_v44  ;;  %v839_v31 = vld [vmem:[%s1502_s7] sm:$0x3] }
 0x304   : > { %v703_v52 = vmax.f32 %v681_v45, 0.0 }
 0x307   : > { %v695_v30 = vpop.f32.mrf.mxu3 }
 0x308   : > { %v696_v32 = vadd.f32 %v695_v30, %v623_v27 }
 0x309   : > { %v683_v34 = vpop.f32.mrf.mxu0 }
 0x30a   : > { %v708_v36 = vmax.f32 %v696_v32, 0.0  ;;  %v684_v42 = vadd.f32 %v683_v34, %v603_v39  ;;  %v844_v32 = vpop.permute.xlu0 %843 }
 0x30c   : > { %798 = vmatpush.msrb.mxu1 %v708_v36  ;;  %1044 = vmatpush.msrb.mxu2 %v708_v36  ;;  %v704_v49 = vmax.f32 %v684_v42, 0.0 }
 0x30e   : > { %799 = vmatpush.msrb.mxu1 %v707_v38  ;;  %1045 = vmatpush.msrb.mxu2 %v707_v38 }
 0x30f   : > { %v698_v39 = vpop.f32.mrf.mxu3 }
 0x310   : > { %800 = vmatpush.msrb.mxu1 %v706_v40  ;;  %1046 = vmatpush.msrb.mxu2 %v706_v40  ;;  %v628_v40 = vpop.permute.xlu1 %627 }
 0x311   : > { %v686_v41 = vpop.f32.mrf.mxu0 }
 0x312   : > { %v687_v43 = vadd.f32 %v686_v41, %v608_v37  ;;  %v699_v41 = vadd.f32 %v698_v39, %v628_v40 }
 0x314   : > { %v705_v46 = vmax.f32 %v687_v43, 0.0  ;;  %v889_v43 = vrot.slane %v699_v41, 2  ;;  %v892_v50 = vrot.slane %v699_v41, 4 }
 0x316   : > { %801 = vmatpush.msrb.mxu1 %v705_v46  ;;  %1047 = vmatpush.msrb.mxu2 %v705_v46  ;;  %v891_v47 = vmul.f32 %v889_v43, %v699_v41 }
 0x318   : > { %802 = vmatpush.msrb.mxu1 %v704_v49  ;;  %1048 = vmatpush.msrb.mxu2 %v704_v49 }
 0x31a   : > { %803 = vmatpush.msrb.mxu1 %v703_v52  ;;  %1049 = vmatpush.msrb.mxu2 %v703_v52 }
 0x31c   : > { %804 = vmatpush.msrb.mxu1 %v702_v53  ;;  %1050 = vmatpush.msrb.mxu2 %v702_v53  ;;  %v894_v53 = vmul.f32 %v892_v50, %v891_v47 }
 0x31e   : > { %805 = vmatpush.msrb.mxu1 %v701_v54  ;;  %1051 = vmatpush.msrb.mxu2 %v701_v54 }
 0x31f   : > { %1025 = vmatmul.msk.f32.vlgmr.msrb.gmra.mxu1 %vm765_vm1, %v709_v55  ;;  %1030 = vmatmul.msk.f32.vlgmr.msrb.gmra.mxu2 %vm765_vm1, %v714_v56  ;;  %v895_v56 = vrot.slane %v699_v41, 6 }
 0x327   : > { %1026 = vmatmul.msk.f32.gmra.mxu1 %vm765_vm1, %v710_v57  ;;  %1031 = vmatmul.msk.f32.gmra.mxu2 %vm765_vm1, %v715_v58  ;;  %v897_v58 = vmul.f32 %v895_v56, %v894_v53 }
 0x32f   : > { %1027 = vmatmul.msk.f32.gmra.mxu1 %vm765_vm1, %v711_v59  ;;  %1032 = vmatmul.msk.f32.gmra.mxu2 %vm765_vm1, %v716_v60 }
 0x337   : > { %1028 = vmatmul.msk.f32.gmra.mxu1 %vm765_vm1, %v712_v61 }
 0x33f   : > { %1029 = vmatmul.msk.f32.gmra.mxu1 %vm765_vm1, %v713_v62 }
 0x39c   : > { %v807_v63 = vpop.f32.mrf.mxu1 }
 0x39d   : > { %v808_v27 = vadd.f32 %v807_v63, %v728_v26 }
 0x39f   : > { %v831_v30 = vmax.f32 %v808_v27, 0.0 }
 0x3a2   : > { %v822_v0 = vpop.f32.mrf.mxu2 }
 0x3a3   : > { %v823_v11 = vadd.f32 %v822_v0, %v753_v9 }
 0x3a4   : > { %v810_v1 = vpop.f32.mrf.mxu1 }
 0x3a5   : > { %v836_v16 = vmax.f32 %v823_v11, 0.0  ;;  %v811_v24 = vadd.f32 %v810_v1, %v733_v23 }
 0x3a7   : > { %v832_v29 = vmax.f32 %v811_v24, 0.0 }
 0x3aa   : > { %v825_v2 = vpop.f32.mrf.mxu2 }
 0x3ab   : > { %v826_v7 = vadd.f32 %v825_v2, %v758_v5 }
 0x3ac   : > { %v813_v4 = vpop.f32.mrf.mxu1 }
 0x3ad   : > { %v837_v14 = vmax.f32 %v826_v7, 0.0  ;;  %v814_v21 = vadd.f32 %v813_v4, %v738_v20 }
 0x3af   : > { %v833_v28 = vmax.f32 %v814_v21, 0.0 }
 0x3b2   : > { %v828_v6 = vpop.f32.mrf.mxu2 }
 0x3b3   : > { %v829_v8 = vadd.f32 %v828_v6, %v763_v3 }
 0x3b4   : > { %v816_v10 = vpop.f32.mrf.mxu1 }
 0x3b5   : > { %v838_v12 = vmax.f32 %v829_v8, 0.0  ;;  %v817_v18 = vadd.f32 %v816_v10, %v743_v15 }
 0x3b7   : > { %857 = vmatpush.msra.mxu2 %v838_v12  ;;  %v834_v25 = vmax.f32 %v817_v18, 0.0 }
 0x3b9   : > { %858 = vmatpush.msra.mxu2 %v837_v14 }
 0x3bb   : > { %859 = vmatpush.msra.mxu2 %v836_v16 }
 0x3bc   : > { %v819_v17 = vpop.f32.mrf.mxu1 }
 0x3bd   : > { %v820_v19 = vadd.f32 %v819_v17, %v748_v13 }
 0x3bf   : > { %v835_v22 = vmax.f32 %v820_v19, 0.0 }
 0x3c1   : > { %860 = vmatpush.msra.mxu2 %v835_v22 }
 0x3c3   : > { %861 = vmatpush.msra.mxu2 %v834_v25 }
 0x3c5   : > { %862 = vmatpush.msra.mxu2 %v833_v28 }
 0x3c7   : > { %863 = vmatpush.msra.mxu2 %v832_v29 }
 0x3c9   : > { %864 = vmatpush.msra.mxu2 %v831_v30 }
 0x3ca   : > { %1033 = vmatmul.msk.f32.vlgmr.msra.gmra.mxu2 %vm765_vm1, %v839_v31 }
 0x44d   : > { %v866_v33 = vpop.f32.mrf.mxu2 }
 0x44e   : > { %v867_v34 = vadd.f32 %v866_v33, %v844_v32 }
 0x450   : > { %v869_v35 = vsub.f32 0.0, %v867_v34 }
 0x452   : > { %v870_v36 = vmul.f32 1.442695, %v869_v35 }
 0x454   : > { %1095 = vpow2.f32 %v870_v36 }
 0x45a   : > { %v1096_v37 = vpop.eup %1095 }
 0x45b   : > { %v872_v38 = vadd.f32 1.0, %v1096_v37 }
 0x45d   : > { %1097 = vrcp.f32 %v872_v38  ;;  %v884_v46 = vand.u32 2147483648, %v872_v38  ;;  %v882_v49 = vand.u32 2147483647, %v872_v38  ;;  %vm878_vm3 = vweird.f32 %v872_v38 }
 0x45f   : > { %v885_v52 = vor.u32 1.1754944e-38, %v884_v46  ;;  %vm883_vm5 = vcmp.eq.f32.partialorder %v882_v49, 8.507059e+37 }
 0x463   : > { %v1098_v42 = vpop.eup %1097 }
 0x464   : > { %v874_v44 = vmul.f32 %v1098_v42, %v872_v38  ;;  %vm879_vm2 = vweird.f32 %v1098_v42 }
 0x465   : > { %vm880_vm4 = vmor %vm878_vm3, %vm879_vm2 }
 0x466   : > { %v875_v45 = vsub.f32 1.0, %v874_v44 }
 0x468   : > { %v876_v48 = vmul.f32 %v1098_v42, %v875_v45 }
 0x46a   : > { %v877_v51 = vadd.f32 %v1098_v42, %v876_v48 }
 0x46c   : > { %v881_v54 = vsel %vm880_vm4, %v1098_v42, %v877_v51 }
 0x46d   : > { %v886_v55 = vsel %vm883_vm5, %v885_v52, %v881_v54 }
 0x46e   : > { %v898_v57 = vmul.f32 %v886_v55, %v886_v55 }
 0x470   : > { %v899_v59 = vmul.f32 %v898_v57, %v898_v57 }
 0x472   : > { %v900_v60 = vmul.f32 %v899_v59, %v897_v58 }
 0x474   : > { %v901_v61 = vsub.f32 0.0, %v900_v60 }
 0x476   : > { %v902_v62 = vmul.f32 1.442695, %v901_v61 }
 0x478   : > { %1099 = vpow2.f32 %v902_v62 }
 0x47e   : > { %v1100_v63 = vpop.eup %1099 }
 0x47f   : > { %v904_v0 = vadd.f32 1.0, %v1100_v63 }
 0x481   : > { %1101 = vrcp.f32 %v904_v0 }
 0x487   : > { %v1102_v1 = vpop.eup %1101 }
 0x488   : > { %906 = vst [vmem:[%s369_s29] sm:$0x3] %v1102_v1 }
 0x489   : > { %1130 = shalt.err (!%p1127_p5)
}
 0x48a   : > { %1052 = dma.vmem_to_hbm [thread:$0]  (%p1256_p6), %s921_s16, 32, %s923_s17, %s908_s21  }
 0x48b PF: > { %s934_s14 = sand.u32 1, %s1153_s30   ;;  %p1055_p7 = pnand %p990_p9, %p1260_p8 }
 0x48c   : > { %s935_s0 = scalar_lea.sflag [#allocation4], %s934_s14 }
 0x48d   : > { %p1056_p10 = pneg %p1055_p7 }
 0x48f   : > { %1148 = dma.done.wait (%p1056_p10), %s935_s0, 32  }
 0x490   : > { %1150 = vsyncadd (%p1056_p10), %s935_s0, 4294967264  ;;  %p19_p11 = scmp.ge.s32.totalorder %s1241_s15, 4   ;;  %s1509_s30 = smov %s1157_s10 }
 0x491   : > { %s1510_s10 = smov %s1161_s11  ;;  %s1511_s11 = smov %s1254_s18 }
 0x492   : > { %s1512_s12 = smov %s1241_s15  ;;  %21 = sbr.rel (!%p19_p11) target bundleno = 5 (0x5), region = 136 }
 0x497   :  { %941 = vsyncpa [#allocation4], 1 }
 0x498   :  { %943 = vsyncpa [#allocation4 + $0x1], 1 }

</bundles_post_ra>
